<compile_context>
chip_gen: v5e
topology: v5e:2x2
jax: 0.10.0
libtpu: 0.0.40
codegen_flags: <defaults>
</compile_context>

<pallas_src>
import jax
import jax.numpy as jnp
import numpy as np
from jax.experimental import pallas as pl
from jax.experimental.pallas import tpu as pltpu


def cnn_kernel(x_ref, w_ref, cb_ref, fcw_ref, fcb_ref, out_ref):
    # x_ref:   (B, H*D)   bf16  flattened embedded sequences (row-major (h, d) per sample)
    # w_ref:   (H*D, F)   bf16  effective conv + avg-pool weight
    # cb_ref:  (1, F)     f32   conv bias (added after pooling -- equivalent by linearity)
    # fcw_ref: (1, F)     f32   fc weight (native PyTorch layout)
    # fcb_ref: (1,)       f32   fc bias (SMEM scalar)
    # out_ref: (1, 1, B)  f32   sigmoid outputs for this block (lane-dense)
    pooled = jnp.dot(x_ref[...], w_ref[...],
                     preferred_element_type=jnp.float32)          # (B, F), f32 MXU acc
    h = jnp.maximum(pooled + cb_ref[...], 0.0)                    # ReLU, (B, F) f32

    # FC + sigmoid, produced directly in lane-dense (1, B) orientation:
    # one small (B, F)->(F, B) XLU transpose, then a (1, F) x (F, B) matmul.
    logit = jnp.dot(fcw_ref[...], h.T,
                    preferred_element_type=jnp.float32) + fcb_ref[0]   # (1, B)
    out_ref[0] = jax.nn.sigmoid(logit)


def _round_up(x, m):
    return -(-x // m) * m


def _vmem_capacity_bytes():
    """Per-TensorCore VMEM capacity; falls back to the most conservative value (v7x)."""
    try:
        cap = getattr(pltpu.get_tpu_info(), "vmem_capacity_bytes", None)
        if cap:
            return int(cap)
    except Exception:
        pass
    return 64 << 20


def _pick_block_n(hd, n, *, max_block=1024, min_block=128):
    """Largest batch block whose double-buffered bf16 input fits ~1/3 of this chip's VMEM."""
    per_sample = 2 * _round_up(hd, 128)              # bf16 bytes per lane-padded row
    budget = _vmem_capacity_bytes() // 3
    b = max_block
    while b > min_block and 2 * b * per_sample > budget:
        b //= 2
    # Keep >= 2 grid steps when there is enough work (feeds both v7x TensorCores).
    while b > min_block and -(-n // b) < 2:
        b //= 2
    # Don't over-pad tiny batches; stay a multiple of 128 (lane-dense output blocks,
    # bf16 sublane pack of 16 on the input).
    return min(b, max(min_block, _round_up(n, min_block)))


def cnn_forward(token_ids, embd_table, conv_w, conv_b, fc_w, fc_b, block_n=None):
    """token_ids: (N, H) int32. Returns (N, 1) float32 (matches the PyTorch module)."""
    N, H = token_ids.shape
    V, D = embd_table.shape
    Fo, _, K = conv_w.shape
    if H < K:
        raise ValueError(f"sequence length H={H} must be >= conv kernel size K={K}")
    L = H - K + 1                                     # valid conv length (stride=1)
    HD = H * D

    if block_n is None:
        block_n = _pick_block_n(HD, N)
    G = -(-N // block_n)                              # number of batch blocks
    N_pad = G * block_n
    if N_pad != N:
        # pad with token 0 (valid id); padded rows are computed then discarded
        token_ids = jnp.pad(token_ids, ((0, N_pad - N), (0, 0)))

    # --- glue in plain JAX (small, fused by XLA) --------------------------------------
    # bf16 table *before* the gather: halves gather-side HBM reads and the intermediate.
    emb = embd_table.astype(jnp.bfloat16)[token_ids]               # (N_pad, H, D) bf16
    x2d = emb.reshape(N_pad, HD)                                   # free row-major reshape

    # Effective conv + avg-pool weight:
    #   W_eff[h, d, f] = (1/L) * sum_{k : max(0, h-L+1) <= k <= min(K-1, h)} w[k, d, f]
    w_kdf = jnp.transpose(conv_w, (2, 1, 0)).astype(jnp.float32)   # (K, D, F)
    w_eff = jnp.zeros((H, D, Fo), jnp.float32)
    for k in range(K):                                             # K is small and static
        w_eff = w_eff.at[k:k + L].add(w_kdf[k])
    w_eff = (w_eff / L).reshape(HD, Fo).astype(jnp.bfloat16)       # (H*D, F) bf16

    cb = conv_b.reshape(1, Fo).astype(jnp.float32)
    fcw = fc_w.reshape(1, Fo).astype(jnp.float32)
    fcb = fc_b.reshape(1).astype(jnp.float32)

    # --- VMEM accounting -> explicit scoped-VMEM limit --------------------------------
    cap = _vmem_capacity_bytes()
    in_bytes = 2 * block_n * _round_up(HD, 128) * 2                # dbl-buffered bf16 input
    w_bytes = 2 * _round_up(HD, 16) * _round_up(Fo, 128) * 2       # dbl-buffered bf16 W_eff
    out_bytes = 2 * 8 * _round_up(block_n, 128) * 4                # dbl-buffered f32 output
    vmem_limit = int(min(cap, max(32 << 20,
                                  in_bytes + w_bytes + out_bytes + (8 << 20))))

    out = pl.pallas_call(
        cnn_kernel,
        out_shape=jax.ShapeDtypeStruct((G, 1, block_n), jnp.float32),
        grid_spec=pltpu.PrefetchScalarGridSpec(
            num_scalar_prefetch=0,
            grid=(G,),
            in_specs=[
                pl.BlockSpec((block_n, HD), lambda g: (g, 0)),     # embedded activations
                pl.BlockSpec((HD, Fo), lambda g: (0, 0)),          # W_eff (resident)
                pl.BlockSpec((1, Fo), lambda g: (0, 0)),           # conv bias
                pl.BlockSpec((1, Fo), lambda g: (0, 0)),           # fc weight
                pl.BlockSpec(memory_space=pltpu.MemorySpace.SMEM), # fc bias (scalar)
            ],
            out_specs=pl.BlockSpec((1, 1, block_n), lambda g: (g, 0, 0)),
        ),
        compiler_params=pltpu.CompilerParams(
            dimension_semantics=("parallel",),                     # megacore-friendly
            vmem_limit_bytes=vmem_limit),
    )(x2d, w_eff, cb, fcw, fcb)                                    # (G, 1, block_n)

    return out.reshape(N_pad, 1)[:N]


def cnn_reference(token_ids, embd_table, conv_w, conv_b, fc_w, fc_b):
    """Pure-JAX (f32) reference replicating the PyTorch forward (mode='avg')."""
    emb = embd_table[token_ids]                     # (N, H, D)
    x = jnp.transpose(emb, (0, 2, 1))               # (N, D, H)  (NCL like PyTorch)
    y = jax.lax.conv_general_dilated(
        x, conv_w, window_strides=(1,), padding="VALID",
        dimension_numbers=("NCH", "OIH", "NCH"))    # (N, F, L)
    y = y + conv_b[None, :, None]
    pooled = jnp.mean(y, axis=2)                    # (N, F)
    h = jnp.maximum(pooled, 0.0)
    return jax.nn.sigmoid(h @ fc_w.T + fc_b)        # (N, 1)


if __name__ == "__main__":
    # Small shapes consistent with the module's forward: x is (N, H) word idx.
    N, H = 2, 16          # batch, sequence length
    V, D = 50, 32         # vocab size, embedding dim (module default D=300, kept small)
    Fo, K = 8, 5          # conv output channels, kernel size

    key = jax.random.PRNGKey(0)
    k_tok, k_emb, k_cw, k_cb, k_fw, k_fb = jax.random.split(key, 6)

    token_ids = jax.random.randint(k_tok, (N, H), 0, V, dtype=jnp.int32)

    # Deterministic parameter init (shapes match nn.Embedding / nn.Conv1d / nn.Linear).
    embd_table = jax.random.normal(k_emb, (V, D), dtype=jnp.float32)
    cw_bound = 1.0 / np.sqrt(D * K)
    conv_w = jax.random.uniform(k_cw, (Fo, D, K), jnp.float32, -cw_bound, cw_bound)
    conv_b = jax.random.uniform(k_cb, (Fo,), jnp.float32, -cw_bound, cw_bound)
    fc_bound = 1.0 / np.sqrt(Fo)
    fc_w = jax.random.uniform(k_fw, (1, Fo), jnp.float32, -fc_bound, fc_bound)
    fc_b = jax.random.uniform(k_fb, (1,), jnp.float32, -fc_bound, fc_bound)

    fwd = jax.jit(cnn_forward)
    out = jax.block_until_ready(fwd(token_ids, embd_table, conv_w, conv_b, fc_w, fc_b))
    ref = jax.block_until_ready(
        cnn_reference(token_ids, embd_table, conv_w, conv_b, fc_w, fc_b))

    assert out.shape == (N, 1), out.shape
    # bf16 activations + bf16 effective weight in the kernel vs f32 reference.
    np.testing.assert_allclose(np.asarray(out), np.asarray(ref), rtol=1e-2, atol=1e-2)
    print("KERNEL_OK")
</pallas_src>

<mosaic_0001>
module attributes {stable_mosaic.version = 11 : i64} {
  func.func @cnn_kernel(%arg0: i32, %arg1: memref<128x512xbf16, #tpu.memory_space<vmem>>, %arg2: memref<512x8xbf16, #tpu.memory_space<vmem>>, %arg3: memref<1x8xf32, #tpu.memory_space<vmem>>, %arg4: memref<1x8xf32, #tpu.memory_space<vmem>>, %arg5: memref<1xf32, #tpu.memory_space<smem>>, %arg6: memref<1x1x128xf32, #tpu.memory_space<vmem>>) attributes {dimension_semantics = [#tpu.dimension_semantics<parallel>], iteration_bounds = array<i64: 1>, scalar_prefetch = 0 : i64, scratch_operands = 0 : i64, tpu.core_type = #tpu.core_type<tc>, window_params = [{transform_indices = @transform_0, window_bounds = array<i64: 128, 512>}, {pipeline_mode = #tpu.pipeline_mode<synchronous>, transform_indices = @transform_1, window_bounds = array<i64: 512, 8>}, {pipeline_mode = #tpu.pipeline_mode<synchronous>, transform_indices = @transform_2, window_bounds = array<i64: 1, 8>}, {pipeline_mode = #tpu.pipeline_mode<synchronous>, transform_indices = @transform_3, window_bounds = array<i64: 1, 8>}, {transform_indices = @transform_4, window_bounds = array<i64: 1>}, {transform_indices = @transform_5, window_bounds = array<i64: 1, 1, 128>}]} {
    %c0 = arith.constant 0 : index
    %c0_0 = arith.constant 0 : index
    %0 = vector.load %arg1[%c0, %c0_0] : memref<128x512xbf16, #tpu.memory_space<vmem>>, vector<128x512xbf16>
    %c0_1 = arith.constant 0 : index
    %c0_2 = arith.constant 0 : index
    %1 = vector.load %arg2[%c0_1, %c0_2] : memref<512x8xbf16, #tpu.memory_space<vmem>>, vector<512x8xbf16>
    %cst = arith.constant dense<0.000000e+00> : vector<128x8xf32>
    %2 = tpu.matmul %0, %1, %cst {dimension_numbers = #tpu.dot_dimension_numbers<[1], [0], [0], [1], [0, 0, 1, 1], [], []>} : vector<128x512xbf16>, vector<512x8xbf16>, vector<128x8xf32> -> vector<128x8xf32>
    %c0_3 = arith.constant 0 : index
    %c0_4 = arith.constant 0 : index
    %3 = vector.load %arg3[%c0_3, %c0_4] : memref<1x8xf32, #tpu.memory_space<vmem>>, vector<1x8xf32>
    %4 = vector.broadcast %3 : vector<1x8xf32> to vector<128x8xf32>
    %5 = arith.addf %2, %4 : vector<128x8xf32>
    %cst_5 = arith.constant 0.000000e+00 : f32
    %6 = vector.broadcast %cst_5 : f32 to vector<128x8xf32>
    %7 = arith.maximumf %5, %6 : vector<128x8xf32>
    %c0_6 = arith.constant 0 : index
    %c0_7 = arith.constant 0 : index
    %8 = vector.load %arg4[%c0_6, %c0_7] : memref<1x8xf32, #tpu.memory_space<vmem>>, vector<1x8xf32>
    %9 = tpu.transpose %7, [1, 0] : vector<128x8xf32> -> vector<8x128xf32>
    %cst_8 = arith.constant dense<0.000000e+00> : vector<1x128xf32>
    %10 = tpu.matmul %8, %9, %cst_8 {dimension_numbers = #tpu.dot_dimension_numbers<[1], [0], [0], [1], [0, 0, 1, 1], [], []>} : vector<1x8xf32>, vector<8x128xf32>, vector<1x128xf32> -> vector<1x128xf32>
    %c0_9 = arith.constant 0 : index
    %11 = memref.load %arg5[%c0_9] : memref<1xf32, #tpu.memory_space<smem>>
    %12 = vector.broadcast %11 : f32 to vector<1x128xf32>
    %13 = arith.addf %10, %12 : vector<1x128xf32>
    %14 = arith.negf %13 : vector<1x128xf32>
    %15 = math.exp %14 : vector<1x128xf32>
    %cst_10 = arith.constant 1.000000e+00 : f32
    %16 = vector.broadcast %cst_10 : f32 to vector<1x128xf32>
    %17 = arith.addf %16, %15 : vector<1x128xf32>
    %18 = arith.divf %16, %17 : vector<1x128xf32>
    %c0_11 = arith.constant 0 : index
    %c0_12 = arith.constant 0 : index
    %c0_13 = arith.constant 0 : index
    %19 = vector.load %arg6[%c0_11, %c0_12, %c0_13] : memref<1x1x128xf32, #tpu.memory_space<vmem>>, vector<1x1x128xf32>
    %20 = vector.shape_cast %19 : vector<1x1x128xf32> to vector<1x128xf32>
    %21 = vector.shape_cast %18 : vector<1x128xf32> to vector<1x1x128xf32>
    tpu.vector_store %arg6[%c0_11, %c0_12, %c0_13], %21 {strides = array<i32>} : memref<1x1x128xf32, #tpu.memory_space<vmem>>, vector<1x1x128xf32>,
    return
  }
  func.func @transform_0(%arg0: i32) -> (i32, i32) {
    %c0_i32 = arith.constant 0 : i32
    %c0_i32_0 = arith.constant 0 : i32
    return %arg0, %c0_i32 : i32, i32
  }
  func.func @transform_1(%arg0: i32) -> (i32, i32) {
    %c0_i32 = arith.constant 0 : i32
    %c0_i32_0 = arith.constant 0 : i32
    %c0_i32_1 = arith.constant 0 : i32
    return %c0_i32, %c0_i32_0 : i32, i32
  }
  func.func @transform_2(%arg0: i32) -> (i32, i32) {
    %c0_i32 = arith.constant 0 : i32
    %c0_i32_0 = arith.constant 0 : i32
    %c0_i32_1 = arith.constant 0 : i32
    return %c0_i32, %c0_i32_0 : i32, i32
  }
  func.func @transform_3(%arg0: i32) -> (i32, i32) {
    %c0_i32 = arith.constant 0 : i32
    %c0_i32_0 = arith.constant 0 : i32
    %c0_i32_1 = arith.constant 0 : i32
    return %c0_i32, %c0_i32_0 : i32, i32
  }
  func.func @transform_4(%arg0: i32) -> i32 {
    %c0_i32 = arith.constant 0 : i32
    %c0_i32_0 = arith.constant 0 : i32
    return %c0_i32 : i32
  }
  func.func @transform_5(%arg0: i32) -> (i32, i32, i32) {
    %c0_i32 = arith.constant 0 : i32
    %c0_i32_0 = arith.constant 0 : i32
    %c0_i32_1 = arith.constant 0 : i32
    return %arg0, %c0_i32, %c0_i32_0 : i32, i32, i32
  }
}

</mosaic_0001>

<bundles_post_ra>
// kernel: cnn_forward.1
= control target key start
LH: loop header
LB: loop body
LE: loop exit
PB: predicated region body
PF: predicated region fallthrough
CT: control target
= control target key end

     0   :  { %vm688_vm0 = vcmask 64512   ;;  %s1519_s1 = inlined_call_operand.vmem [shape: bf16[512,8], index: 1, kind: input, shape index: {}]   ;;  %s1520_s2 = inlined_call_operand.vmem [shape: f32[1,8], index: 2, kind: input, shape index: {}]   ;;  %s1521_s0 = inlined_call_operand.vmem [shape: bf16[128,512], index: 0, kind: input, shape index: {}]   ;;  %s1522_s3 = inlined_call_operand.vmem [shape: f32[1,8], index: 3, kind: input, shape index: {}]   ;;  %s1523_s4 = inlined_call_operand.<no memory space> [shape: f32[1], index: 4, kind: input, shape index: {}]   ;;  %s1524_s5 = inlined_call_operand.vmem [shape: f32[1,1,128], index: 5, kind: output, shape index: {}]  }
   0x1   :  { %v1097_v0 = vld [vmem:[%s1519_s1 + $0x38] sm:$0xff]  ;;  %v1096_v4 = vld [vmem:[%s1519_s1 + $0x30] sm:$0xff]  ;;  %v1095_v8 = vld [vmem:[%s1519_s1 + $0x28] sm:$0xff] }
   0x2   :  { %v1105_v1 = vld [vmem:[%s1519_s1 + $0x78] sm:$0xff]  ;;  %473 = vmatpush.bf16.msra.mxu0 %v1097_v0  ;;  %v1104_v5 = vld [vmem:[%s1519_s1 + $0x70] sm:$0xff]  ;;  %v1103_v9 = vld [vmem:[%s1519_s1 + $0x68] sm:$0xff] }
   0x3   :  { %v1113_v2 = vld [vmem:[%s1519_s1 + $0xb8] sm:$0xff]  ;;  %522 = vmatpush.bf16.msra.mxu1 %v1105_v1  ;;  %v1112_v6 = vld [vmem:[%s1519_s1 + $0xb0] sm:$0xff]  ;;  %v1111_v10 = vld [vmem:[%s1519_s1 + $0xa8] sm:$0xff] }
   0x4   :  { %v1121_v3 = vld [vmem:[%s1519_s1 + $0xf8] sm:$0xff]  ;;  %571 = vmatpush.bf16.msra.mxu2 %v1113_v2  ;;  %v1120_v7 = vld [vmem:[%s1519_s1 + $0xf0] sm:$0xff]  ;;  %v1119_v11 = vld [vmem:[%s1519_s1 + $0xe8] sm:$0xff] }
   0x5   :  { %620 = vmatpush.bf16.msra.mxu3 %v1121_v3  ;;  %v1094_v12 = vld [vmem:[%s1519_s1 + $0x20] sm:$0xff]  ;;  %v1093_v16 = vld [vmem:[%s1519_s1 + $0x18] sm:$0xff]  ;;  %v1092_v20 = vld [vmem:[%s1519_s1 + $0x10] sm:$0xff] }
   0x6   :  { %474 = vmatpush.bf16.msra.mxu0 %v1096_v4  ;;  %v1102_v13 = vld [vmem:[%s1519_s1 + $0x60] sm:$0xff]  ;;  %v1101_v17 = vld [vmem:[%s1519_s1 + $0x58] sm:$0xff]  ;;  %v1100_v21 = vld [vmem:[%s1519_s1 + $0x50] sm:$0xff] }
   0x7   :  { %523 = vmatpush.bf16.msra.mxu1 %v1104_v5  ;;  %v1110_v14 = vld [vmem:[%s1519_s1 + $0xa0] sm:$0xff]  ;;  %v1109_v18 = vld [vmem:[%s1519_s1 + $0x98] sm:$0xff]  ;;  %v1108_v22 = vld [vmem:[%s1519_s1 + $0x90] sm:$0xff] }
   0x8   :  { %572 = vmatpush.bf16.msra.mxu2 %v1112_v6  ;;  %v1118_v15 = vld [vmem:[%s1519_s1 + $0xe0] sm:$0xff]  ;;  %v1117_v19 = vld [vmem:[%s1519_s1 + $0xd8] sm:$0xff]  ;;  %v1116_v23 = vld [vmem:[%s1519_s1 + $0xd0] sm:$0xff] }
   0x9   :  { %621 = vmatpush.bf16.msra.mxu3 %v1120_v7  ;;  %v1091_v24 = vld [vmem:[%s1519_s1 + $0x8] sm:$0xff]  ;;  %v1090_v28 = vld [vmem:[%s1519_s1] sm:$0xff]  ;;  %v1060_v33 = vld [vmem:[%s1521_s0 + $0xc] sm:$0xf0] }
   0xa   :  { %475 = vmatpush.bf16.msra.mxu0 %v1095_v8  ;;  %v1099_v25 = vld [vmem:[%s1519_s1 + $0x48] sm:$0xff]  ;;  %v1098_v29 = vld [vmem:[%s1519_s1 + $0x40] sm:$0xff]  ;;  %v788_v35 = vld [vmem:[%s1521_s0 + $0x10] sm:$0xf0] }
   0xb   :  { %524 = vmatpush.bf16.msra.mxu1 %v1103_v9  ;;  %v1107_v26 = vld [vmem:[%s1519_s1 + $0x88] sm:$0xff]  ;;  %v1106_v30 = vld [vmem:[%s1519_s1 + $0x80] sm:$0xff]  ;;  %v1061_v37 = vld [vmem:[%s1521_s0 + $0x14] sm:$0xf0] }
   0xc   :  { %573 = vmatpush.bf16.msra.mxu2 %v1111_v10  ;;  %v1115_v27 = vld [vmem:[%s1519_s1 + $0xc8] sm:$0xff]  ;;  %v1114_v31 = vld [vmem:[%s1519_s1 + $0xc0] sm:$0xff]  ;;  %v796_v39 = vld [vmem:[%s1521_s0 + $0x18] sm:$0xf0] }
   0xd   :  { %622 = vmatpush.bf16.msra.mxu3 %v1119_v11  ;;  %v786_v32 = vld [vmem:[%s1521_s0] sm:$0xf]  ;;  %v1058_v34 = vld [vmem:[%s1521_s0 + $0x4] sm:$0xf]  ;;  %v794_v36 = vld [vmem:[%s1521_s0 + $0x8] sm:$0xf] }
   0xe   :  { %476 = vmatpush.bf16.msra.mxu0 %v1094_v12  ;;  %v1059_v38 = vld [vmem:[%s1521_s0 + $0xc] sm:$0xf]  ;;  %v787_v40 = vor.u32 %v1060_v33, %v786_v32  ;;  %v791_v41 = vor.u32 %v1058_v34, %v788_v35  ;;  %v795_v42 = vor.u32 %v1061_v37, %v794_v36  ;;  %v802_v44 = vld [vmem:[%s1521_s0 + $0x20] sm:$0xf]  ;;  %v1064_v45 = vld [vmem:[%s1521_s0 + $0x2c] sm:$0xf0] }
   0xf   :  { %525 = vmatpush.bf16.msra.mxu1 %v1102_v13  ;;  %v799_v43 = vor.u32 %v1059_v38, %v796_v39  ;;  %v1062_v46 = vld [vmem:[%s1521_s0 + $0x24] sm:$0xf]  ;;  %v804_v47 = vld [vmem:[%s1521_s0 + $0x30] sm:$0xf0]  ;;  %v810_v48 = vld [vmem:[%s1521_s0 + $0x28] sm:$0xf]  ;;  %v803_v52 = vor.u32 %v1064_v45, %v802_v44 }
  0x10   :  { %574 = vmatpush.bf16.msra.mxu2 %v1110_v14  ;;  %v1065_v49 = vld [vmem:[%s1521_s0 + $0x34] sm:$0xf0]  ;;  %v1063_v50 = vld [vmem:[%s1521_s0 + $0x2c] sm:$0xf]  ;;  %v812_v51 = vld [vmem:[%s1521_s0 + $0x38] sm:$0xf0]  ;;  %v807_v53 = vor.u32 %v1062_v46, %v804_v47 }
  0x11   :  { %623 = vmatpush.bf16.msra.mxu3 %v1118_v15  ;;  %v811_v54 = vor.u32 %v1065_v49, %v810_v48  ;;  %v815_v55 = vor.u32 %v1063_v50, %v812_v51  ;;  %v818_v56 = vld [vmem:[%s1521_s0 + $0x40] sm:$0xf]  ;;  %v1068_v57 = vld [vmem:[%s1521_s0 + $0x4c] sm:$0xf0]  ;;  %v1066_v58 = vld [vmem:[%s1521_s0 + $0x44] sm:$0xf] }
  0x12   :  { %477 = vmatpush.bf16.msra.mxu0 %v1093_v16  ;;  %v820_v59 = vld [vmem:[%s1521_s0 + $0x50] sm:$0xf0]  ;;  %v826_v60 = vld [vmem:[%s1521_s0 + $0x48] sm:$0xf]  ;;  %v1069_v61 = vld [vmem:[%s1521_s0 + $0x54] sm:$0xf0]  ;;  %v819_v0 = vor.u32 %v1068_v57, %v818_v56 }
  0x13   :  { %526 = vmatpush.bf16.msra.mxu1 %v1101_v17  ;;  %v1067_v62 = vld [vmem:[%s1521_s0 + $0x4c] sm:$0xf]  ;;  %v828_v63 = vld [vmem:[%s1521_s0 + $0x58] sm:$0xf0]  ;;  %v823_v1 = vor.u32 %v1066_v58, %v820_v59  ;;  %v827_v2 = vor.u32 %v1069_v61, %v826_v60  ;;  %v834_v4 = vld [vmem:[%s1521_s0 + $0x60] sm:$0xf] }
  0x14   :  { %575 = vmatpush.bf16.msra.mxu2 %v1109_v18  ;;  %v831_v3 = vor.u32 %v1067_v62, %v828_v63  ;;  %v1072_v5 = vld [vmem:[%s1521_s0 + $0x6c] sm:$0xf0]  ;;  %v1070_v6 = vld [vmem:[%s1521_s0 + $0x64] sm:$0xf]  ;;  %v836_v7 = vld [vmem:[%s1521_s0 + $0x70] sm:$0xf0] }
  0x15   :  { %624 = vmatpush.bf16.msra.mxu3 %v1117_v19  ;;  %v842_v8 = vld [vmem:[%s1521_s0 + $0x68] sm:$0xf]  ;;  %v1073_v9 = vld [vmem:[%s1521_s0 + $0x74] sm:$0xf0]  ;;  %v1071_v10 = vld [vmem:[%s1521_s0 + $0x6c] sm:$0xf]  ;;  %v835_v12 = vor.u32 %v1072_v5, %v834_v4  ;;  %v839_v13 = vor.u32 %v1070_v6, %v836_v7 }
  0x16   :  { %478 = vmatpush.bf16.msra.mxu0 %v1092_v20  ;;  %v844_v11 = vld [vmem:[%s1521_s0 + $0x78] sm:$0xf0]  ;;  %v843_v14 = vor.u32 %v1073_v9, %v842_v8  ;;  %v850_v16 = vld [vmem:[%s1521_s0 + $0x80] sm:$0xf]  ;;  %v1076_v17 = vld [vmem:[%s1521_s0 + $0x8c] sm:$0xf0] }
  0x17   :  { %527 = vmatpush.bf16.msra.mxu1 %v1100_v21  ;;  %v847_v15 = vor.u32 %v1071_v10, %v844_v11  ;;  %v1074_v18 = vld [vmem:[%s1521_s0 + $0x84] sm:$0xf]  ;;  %v852_v19 = vld [vmem:[%s1521_s0 + $0x90] sm:$0xf0]  ;;  %v858_v20 = vld [vmem:[%s1521_s0 + $0x88] sm:$0xf] }
  0x18   :  { %576 = vmatpush.bf16.msra.mxu2 %v1108_v22  ;;  %v1077_v21 = vld [vmem:[%s1521_s0 + $0x94] sm:$0xf0]  ;;  %v1075_v22 = vld [vmem:[%s1521_s0 + $0x8c] sm:$0xf]  ;;  %v874_v32 = vld [vmem:[%s1521_s0 + $0xa8] sm:$0xf] }
  0x19   :  { %625 = vmatpush.bf16.msra.mxu3 %v1116_v23  ;;  %v860_v23 = vld [vmem:[%s1521_s0 + $0x98] sm:$0xf0]  ;;  %v1081_v33 = vld [vmem:[%s1521_s0 + $0xb4] sm:$0xf0]  ;;  %v1079_v34 = vld [vmem:[%s1521_s0 + $0xac] sm:$0xf] }
  0x1a   :  { %479 = vmatpush.bf16.msra.mxu0 %v1091_v24  ;;  %v851_v24 = vor.u32 %v1076_v17, %v850_v16  ;;  %v876_v35 = vld [vmem:[%s1521_s0 + $0xb8] sm:$0xf0]  ;;  %v875_v38 = vor.u32 %v1081_v33, %v874_v32  ;;  %v890_v44 = vld [vmem:[%s1521_s0 + $0xc8] sm:$0xf]  ;;  %v1085_v45 = vld [vmem:[%s1521_s0 + $0xd4] sm:$0xf0] }
  0x1b   :  { %528 = vmatpush.bf16.msra.mxu1 %v1099_v25  ;;  %v855_v25 = vor.u32 %v1074_v18, %v852_v19  ;;  %v879_v39 = vor.u32 %v1079_v34, %v876_v35  ;;  %v1083_v46 = vld [vmem:[%s1521_s0 + $0xcc] sm:$0xf]  ;;  %v892_v47 = vld [vmem:[%s1521_s0 + $0xd8] sm:$0xf0]  ;;  %v891_v50 = vor.u32 %v1085_v45, %v890_v44  ;;  %v906_v56 = vld [vmem:[%s1521_s0 + $0xe8] sm:$0xf] }
  0x1c   :  { %577 = vmatpush.bf16.msra.mxu2 %v1107_v26  ;;  %v859_v26 = vor.u32 %v1077_v21, %v858_v20  ;;  %v895_v51 = vor.u32 %v1083_v46, %v892_v47  ;;  %v1089_v57 = vld [vmem:[%s1521_s0 + $0xf4] sm:$0xf0]  ;;  %v1087_v58 = vld [vmem:[%s1521_s0 + $0xec] sm:$0xf]  ;;  %v908_v59 = vld [vmem:[%s1521_s0 + $0xf8] sm:$0xf0] }
  0x1d   :  { %626 = vmatpush.bf16.msra.mxu3 %v1115_v27  ;;  %v863_v27 = vor.u32 %v1075_v22, %v860_v23  ;;  %v907_v62 = vor.u32 %v1089_v57, %v906_v56  ;;  %v911_v63 = vor.u32 %v1087_v58, %v908_v59 }
  0x1e   :  { %480 = vmatpush.bf16.msra.mxu0 %v1090_v28  ;;  %v866_v28 = vld [vmem:[%s1521_s0 + $0xa0] sm:$0xf] }
  0x1f   :  { %529 = vmatpush.bf16.msra.mxu1 %v1098_v29  ;;  %v1080_v29 = vld [vmem:[%s1521_s0 + $0xac] sm:$0xf0] }
  0x20   :  { %578 = vmatpush.bf16.msra.mxu2 %v1106_v30  ;;  %v1078_v30 = vld [vmem:[%s1521_s0 + $0xa4] sm:$0xf]  ;;  %v867_v36 = vor.u32 %v1080_v29, %v866_v28 }
  0x21   :  { %627 = vmatpush.bf16.msra.mxu3 %v1114_v31  ;;  %481 = vmatmul.bf16.vlgmr.msra.gmra.mxu0 %v787_v40  ;;  %v868_v31 = vld [vmem:[%s1521_s0 + $0xb0] sm:$0xf0]  ;;  %v882_v40 = vld [vmem:[%s1521_s0 + $0xc0] sm:$0xf] }
  0x22   :  { %530 = vmatmul.bf16.vlgmr.msra.gmra.mxu1 %v791_v41  ;;  %v871_v37 = vor.u32 %v1078_v30, %v868_v31  ;;  %v1084_v41 = vld [vmem:[%s1521_s0 + $0xcc] sm:$0xf0] }
  0x23   :  { %579 = vmatmul.bf16.vlgmr.msra.gmra.mxu2 %v795_v42  ;;  %v1082_v42 = vld [vmem:[%s1521_s0 + $0xc4] sm:$0xf]  ;;  %v883_v48 = vor.u32 %v1084_v41, %v882_v40 }
  0x24   :  { %628 = vmatmul.bf16.vlgmr.msra.gmra.mxu3 %v799_v43  ;;  %v884_v43 = vld [vmem:[%s1521_s0 + $0xd0] sm:$0xf0] }
  0x25   :  { %v887_v49 = vor.u32 %v1082_v42, %v884_v43 }
  0x31   :  { %486 = vmatmul.bf16.gmra.mxu0 %v803_v52  ;;  %v898_v52 = vld [vmem:[%s1521_s0 + $0xe0] sm:$0xf] }
  0x32   :  { %535 = vmatmul.bf16.gmra.mxu1 %v807_v53  ;;  %v1088_v53 = vld [vmem:[%s1521_s0 + $0xec] sm:$0xf0] }
  0x33   :  { %584 = vmatmul.bf16.gmra.mxu2 %v811_v54  ;;  %v1086_v54 = vld [vmem:[%s1521_s0 + $0xe4] sm:$0xf]  ;;  %v899_v60 = vor.u32 %v1088_v53, %v898_v52 }
  0x34   :  { %633 = vmatmul.bf16.gmra.mxu3 %v815_v55  ;;  %v900_v55 = vld [vmem:[%s1521_s0 + $0xf0] sm:$0xf0] }
  0x35   :  { %v903_v61 = vor.u32 %v1086_v54, %v900_v55 }
  0x41   :  { %491 = vmatmul.bf16.gmra.mxu0 %v819_v0  ;;  %v1448_v0 = vld [vmem:[%s1520_s2] ss:$0 sm:$0xff] }
  0x42   :  { %540 = vmatmul.bf16.gmra.mxu1 %v823_v1 }
  0x43   :  { %589 = vmatmul.bf16.gmra.mxu2 %v827_v2 }
  0x44   :  { %638 = vmatmul.bf16.gmra.mxu3 %v831_v3 }
  0x51   :  { %496 = vmatmul.bf16.gmra.mxu0 %v835_v12 }
  0x52   :  { %545 = vmatmul.bf16.gmra.mxu1 %v839_v13 }
  0x53   :  { %594 = vmatmul.bf16.gmra.mxu2 %v843_v14 }
  0x54   :  { %643 = vmatmul.bf16.gmra.mxu3 %v847_v15 }
  0x61   :  { %501 = vmatmul.bf16.gmra.mxu0 %v851_v24 }
  0x62   :  { %550 = vmatmul.bf16.gmra.mxu1 %v855_v25 }
  0x63   :  { %599 = vmatmul.bf16.gmra.mxu2 %v859_v26 }
  0x64   :  { %648 = vmatmul.bf16.gmra.mxu3 %v863_v27 }
  0x71   :  { %506 = vmatmul.bf16.gmra.mxu0 %v867_v36 }
  0x72   :  { %555 = vmatmul.bf16.gmra.mxu1 %v871_v37 }
  0x73   :  { %604 = vmatmul.bf16.gmra.mxu2 %v875_v38 }
  0x74   :  { %653 = vmatmul.bf16.gmra.mxu3 %v879_v39 }
  0x81   :  { %511 = vmatmul.bf16.gmra.mxu0 %v883_v48 }
  0x82   :  { %560 = vmatmul.bf16.gmra.mxu1 %v887_v49 }
  0x83   :  { %609 = vmatmul.bf16.gmra.mxu2 %v891_v50 }
  0x84   :  { %658 = vmatmul.bf16.gmra.mxu3 %v895_v51 }
  0x91   :  { %516 = vmatmul.bf16.gmra.mxu0 %v899_v60 }
  0x92   :  { %565 = vmatmul.bf16.gmra.mxu1 %v903_v61 }
  0x93   :  { %614 = vmatmul.bf16.gmra.mxu2 %v907_v62 }
  0x94   :  { %663 = vmatmul.bf16.gmra.mxu3 %v911_v63 }
  0x9e   :  { %v482_v1 = vpop.f32.mrf.mxu0 }
  0x9f   :  { %v531_v2 = vpop.f32.mrf.mxu1  ;;  %v483_v3 = vadd.f32 %v1448_v0, %v482_v1 }
  0xa1   :  { %v532_v4 = vadd.f32 %v531_v2, %v483_v3 }
  0xa6   :  { %v580_v5 = vpop.f32.mrf.mxu2  ;;  %v484_v8 = vpop.f32.mrf.mxu0 }
  0xa7   :  { %v629_v6 = vpop.f32.mrf.mxu3  ;;  %v581_v7 = vadd.f32 %v580_v5, %v532_v4  ;;  %v533_v9 = vpop.f32.mrf.mxu1  ;;  %v485_v10 = vadd.f32 %v1448_v0, %v484_v8 }
  0xa9   :  { %v1452_v11 = vadd.f32 %v629_v6, %v581_v7  ;;  %v534_v12 = vadd.f32 %v533_v9, %v485_v10 }
  0xae   :  { %v582_v13 = vpop.f32.mrf.mxu2  ;;  %v487_v16 = vpop.f32.mrf.mxu0 }
  0xaf   :  { %v631_v14 = vpop.f32.mrf.mxu3  ;;  %v583_v15 = vadd.f32 %v582_v13, %v534_v12  ;;  %v536_v17 = vpop.f32.mrf.mxu1  ;;  %v488_v18 = vadd.f32 %v1448_v0, %v487_v16 }
  0xb1   :  { %v1455_v19 = vadd.f32 %v631_v14, %v583_v15  ;;  %v537_v20 = vadd.f32 %v536_v17, %v488_v18 }
  0xb6   :  { %v585_v21 = vpop.f32.mrf.mxu2  ;;  %v489_v24 = vpop.f32.mrf.mxu0 }
  0xb7   :  { %v634_v22 = vpop.f32.mrf.mxu3  ;;  %v586_v23 = vadd.f32 %v585_v21, %v537_v20  ;;  %v538_v25 = vpop.f32.mrf.mxu1  ;;  %v490_v26 = vadd.f32 %v1448_v0, %v489_v24 }
  0xb9   :  { %v1458_v27 = vadd.f32 %v634_v22, %v586_v23  ;;  %v539_v28 = vadd.f32 %v538_v25, %v490_v26 }
  0xbe   :  { %v587_v29 = vpop.f32.mrf.mxu2  ;;  %v492_v32 = vpop.f32.mrf.mxu0 }
  0xbf   :  { %v636_v30 = vpop.f32.mrf.mxu3  ;;  %v588_v31 = vadd.f32 %v587_v29, %v539_v28  ;;  %v541_v33 = vpop.f32.mrf.mxu1  ;;  %v493_v34 = vadd.f32 %v1448_v0, %v492_v32 }
  0xc1   :  { %v1461_v35 = vadd.f32 %v636_v30, %v588_v31  ;;  %v542_v36 = vadd.f32 %v541_v33, %v493_v34 }
  0xc6   :  { %v590_v37 = vpop.f32.mrf.mxu2  ;;  %v494_v40 = vpop.f32.mrf.mxu0 }
  0xc7   :  { %v639_v38 = vpop.f32.mrf.mxu3  ;;  %v591_v39 = vadd.f32 %v590_v37, %v542_v36  ;;  %v543_v41 = vpop.f32.mrf.mxu1  ;;  %v495_v42 = vadd.f32 %v1448_v0, %v494_v40 }
  0xc9   :  { %v1464_v43 = vadd.f32 %v639_v38, %v591_v39  ;;  %v544_v44 = vadd.f32 %v543_v41, %v495_v42 }
  0xce   :  { %v592_v45 = vpop.f32.mrf.mxu2  ;;  %v497_v48 = vpop.f32.mrf.mxu0 }
  0xcf   :  { %v641_v46 = vpop.f32.mrf.mxu3  ;;  %v593_v47 = vadd.f32 %v592_v45, %v544_v44  ;;  %v546_v49 = vpop.f32.mrf.mxu1  ;;  %v498_v50 = vadd.f32 %v1448_v0, %v497_v48 }
  0xd1   :  { %v1467_v51 = vadd.f32 %v641_v46, %v593_v47  ;;  %v547_v52 = vadd.f32 %v546_v49, %v498_v50 }
  0xd6   :  { %v595_v53 = vpop.f32.mrf.mxu2  ;;  %v499_v56 = vpop.f32.mrf.mxu0 }
  0xd7   :  { %v644_v54 = vpop.f32.mrf.mxu3  ;;  %v596_v55 = vadd.f32 %v595_v53, %v547_v52  ;;  %v548_v57 = vpop.f32.mrf.mxu1  ;;  %v500_v58 = vadd.f32 %v1448_v0, %v499_v56 }
  0xd9   :  { %v1470_v59 = vadd.f32 %v644_v54, %v596_v55  ;;  %v549_v60 = vadd.f32 %v548_v57, %v500_v58 }
  0xde   :  { %v597_v61 = vpop.f32.mrf.mxu2  ;;  %v502_v1 = vpop.f32.mrf.mxu0 }
  0xdf   :  { %v646_v62 = vpop.f32.mrf.mxu3  ;;  %v598_v63 = vadd.f32 %v597_v61, %v549_v60  ;;  %v551_v2 = vpop.f32.mrf.mxu1  ;;  %v503_v3 = vadd.f32 %v1448_v0, %v502_v1 }
  0xe1   :  { %v1473_v4 = vadd.f32 %v646_v62, %v598_v63  ;;  %v552_v5 = vadd.f32 %v551_v2, %v503_v3 }
  0xe6   :  { %v600_v6 = vpop.f32.mrf.mxu2  ;;  %v504_v9 = vpop.f32.mrf.mxu0 }
  0xe7   :  { %v649_v7 = vpop.f32.mrf.mxu3  ;;  %v601_v8 = vadd.f32 %v600_v6, %v552_v5  ;;  %v553_v10 = vpop.f32.mrf.mxu1  ;;  %v505_v12 = vadd.f32 %v1448_v0, %v504_v9 }
  0xe9   :  { %v1476_v13 = vadd.f32 %v649_v7, %v601_v8  ;;  %v554_v14 = vadd.f32 %v553_v10, %v505_v12 }
  0xee   :  { %v602_v15 = vpop.f32.mrf.mxu2  ;;  %v507_v18 = vpop.f32.mrf.mxu0 }
  0xef   :  { %v651_v16 = vpop.f32.mrf.mxu3  ;;  %v603_v17 = vadd.f32 %v602_v15, %v554_v14  ;;  %v556_v20 = vpop.f32.mrf.mxu1  ;;  %v508_v1 = vadd.f32 %v1448_v0, %v507_v18 }
  0xf1   :  { %v652_v21 = vadd.f32 %v651_v16, %v603_v17  ;;  %v557_v7 = vadd.f32 %v556_v20, %v508_v1  ;;  %v677_v20 = vmax.f32 %v1476_v13, 0.0  ;;  %v672_v13 = vmax.f32 %v1461_v35, 0.0 }
  0xf3   :  { %v678_v18 = vmax.f32 %v652_v21, 0.0  ;;  %v673_v21 = vmax.f32 %v1464_v43, 0.0  ;;  %v685_v43 = vld [vmem:[%s1522_s3] sm:$0x1] }
  0xf6   :  { %v605_v22 = vpop.f32.mrf.mxu2  ;;  %v509_v24 = vpop.f32.mrf.mxu0 }
  0xf7   :  { %v654_v23 = vpop.f32.mrf.mxu3  ;;  %v558_v25 = vpop.f32.mrf.mxu1  ;;  %v510_v63 = vadd.f32 %v1448_v0, %v509_v24  ;;  %v606_v12 = vadd.f32 %v605_v22, %v557_v7  ;;  %v676_v22 = vmax.f32 %v1473_v4, 0.0  ;;  %v675_v24 = vmax.f32 %v1470_v59, 0.0 }
  0xf8   :  { %v671_v4 = vmax.f32 %v1458_v27, 0.0  ;;  %v670_v59 = vmax.f32 %v1455_v19, 0.0  ;;  %v687_v27 = vstv %s1523_s4 }
  0xf9   :  { %v559_v6 = vadd.f32 %v558_v25, %v510_v63  ;;  %v655_v16 = vadd.f32 %v654_v23, %v606_v12  ;;  %v674_v23 = vmax.f32 %v1467_v51, 0.0  ;;  %v669_v51 = vmax.f32 %v1452_v11, 0.0 }
  0xfe   :  { %v607_v26 = vpop.f32.mrf.mxu2  ;;  %v512_v29 = vpop.f32.mrf.mxu0 }
  0xff   :  { %v656_v28 = vpop.f32.mrf.mxu3  ;;  %v561_v30 = vpop.f32.mrf.mxu1  ;;  %v513_v52 = vadd.f32 %v1448_v0, %v512_v29  ;;  %v608_v8 = vadd.f32 %v607_v26, %v559_v6 }
 0x101   :  { %v562_v58 = vadd.f32 %v561_v30, %v513_v52  ;;  %v657_v14 = vadd.f32 %v656_v28, %v608_v8 }
 0x103   :  { %v680_v17 = vmax.f32 %v657_v14, 0.0 }
 0x106   :  { %v610_v31 = vpop.f32.mrf.mxu2  ;;  %v514_v33 = vpop.f32.mrf.mxu0 }
 0x107   :  { %v659_v32 = vpop.f32.mrf.mxu3  ;;  %v563_v34 = vpop.f32.mrf.mxu1  ;;  %v515_v48 = vadd.f32 %v1448_v0, %v514_v33  ;;  %v611_v2 = vadd.f32 %v610_v31, %v562_v58 }
 0x109   :  { %v564_v56 = vadd.f32 %v563_v34, %v515_v48  ;;  %v660_v9 = vadd.f32 %v659_v32, %v611_v2 }
 0x10b   :  { %v681_v15 = vmax.f32 %v660_v9, 0.0 }
 0x10e   :  { %v612_v36 = vpop.f32.mrf.mxu2  ;;  %v517_v38 = vpop.f32.mrf.mxu0 }
 0x10f   :  { %v661_v37 = vpop.f32.mrf.mxu3  ;;  %v566_v39 = vpop.f32.mrf.mxu1  ;;  %v518_v42 = vadd.f32 %v1448_v0, %v517_v38  ;;  %v613_v60 = vadd.f32 %v612_v36, %v564_v56 }
 0x111   :  { %v567_v46 = vadd.f32 %v566_v39, %v518_v42  ;;  %v662_v3 = vadd.f32 %v661_v37, %v613_v60 }
 0x113   :  { %v682_v10 = vmax.f32 %v662_v3, 0.0 }
 0x116   :  { %v615_v40 = vpop.f32.mrf.mxu2  ;;  %v519_v44 = vpop.f32.mrf.mxu0 }
 0x117   :  { %v664_v41 = vpop.f32.mrf.mxu3  ;;  %v520_v45 = vadd.f32 %v1448_v0, %v519_v44  ;;  %v568_v47 = vpop.f32.mrf.mxu1  ;;  %v616_v53 = vadd.f32 %v615_v40, %v567_v46  ;;  %v679_v0 = vmax.f32 %v655_v16, 0.0 }
 0x119   :  { %v569_v49 = vadd.f32 %v568_v47, %v520_v45  ;;  %v665_v61 = vadd.f32 %v664_v41, %v616_v53 }
 0x11b   :  { %v683_v5 = vmax.f32 %v665_v61, 0.0 }
 0x11e   :  { %v617_v50 = vpop.f32.mrf.mxu2 }
 0x11f   :  { %v618_v54 = vadd.f32 %v617_v50, %v569_v49  ;;  %v666_v55 = vpop.f32.mrf.mxu3 }
 0x121   :  { %v667_v57 = vadd.f32 %v666_v55, %v618_v54 }
 0x123   :  { %v684_v62 = vmax.f32 %v667_v57, 0.0 }
 0x125   :  { %1040 = vmatpush.xpose.msk.msrb.mxu0 %vm688_vm0, %v684_v62 }
 0x129   :  { %1041 = vmatpush.xpose.msk.msrb.mxu0 %vm688_vm0, %v683_v5 }
 0x12d   :  { %1042 = vmatpush.xpose.msk.msrb.mxu0 %vm688_vm0, %v682_v10 }
 0x131   :  { %1043 = vmatpush.xpose.msk.msrb.mxu0 %vm688_vm0, %v681_v15 }
 0x135   :  { %1044 = vmatpush.xpose.msk.msrb.mxu0 %vm688_vm0, %v680_v17 }
 0x139   :  { %1045 = vmatpush.xpose.msk.msrb.mxu0 %vm688_vm0, %v679_v0 }
 0x13d   :  { %1046 = vmatpush.xpose.msk.msrb.mxu0 %vm688_vm0, %v678_v18 }
 0x141   :  { %1047 = vmatpush.xpose.msk.msrb.mxu0 %vm688_vm0, %v677_v20 }
 0x145   :  { %1048 = vmatpush.xpose.msk.msrb.mxu0 %vm688_vm0, %v676_v22 }
 0x149   :  { %1049 = vmatpush.xpose.msk.msrb.mxu0 %vm688_vm0, %v675_v24 }
 0x14d   :  { %1050 = vmatpush.xpose.msk.msrb.mxu0 %vm688_vm0, %v674_v23 }
 0x151   :  { %1051 = vmatpush.xpose.msk.msrb.mxu0 %vm688_vm0, %v673_v21 }
 0x155   :  { %1052 = vmatpush.xpose.msk.msrb.mxu0 %vm688_vm0, %v672_v13 }
 0x159   :  { %1053 = vmatpush.xpose.msk.msrb.mxu0 %vm688_vm0, %v671_v4 }
 0x15d   :  { %1054 = vmatpush.xpose.msk.msrb.mxu0 %vm688_vm0, %v670_v59 }
 0x161   :  { %1055 = vmatpush.xpose.msk.msrb.mxu0 %vm688_vm0, %v669_v51 }
 0x164   :  { %1056 = vmatmul.msk.f32.vlgmr.msrb.gmra.mxu0 %vm688_vm0, %v685_v43 }
 0x1e1   :  { %v757_v35 = vpop.f32.mrf.mxu0 }
 0x1e2   :  { %v758_v25 = vadd.f32 %v757_v35, %v687_v27 }
 0x1e4   :  { %v1057_v26 = vmul.f32 -1.442695, %v758_v25 }
 0x1e6   :  { %1123 = vpow2.f32 %v1057_v26 }
 0x1ec   :  { %v1124_v19 = vpop.eup %1123 }
 0x1ed   :  { %v763_v28 = vadd.f32 1.0, %v1124_v19 }
 0x1ef   :  { %1125 = vrcp.f32 %v763_v28  ;;  %v775_v31 = vand.u32 2147483648, %v763_v28  ;;  %v773_v33 = vand.u32 2147483647, %v763_v28  ;;  %vm769_vm2 = vweird.f32 %v763_v28 }
 0x1f1   :  { %v776_v36 = vor.u32 1.1754944e-38, %v775_v31  ;;  %vm774_vm4 = vcmp.eq.f32.partialorder %v773_v33, 8.507059e+37 }
 0x1f5   :  { %v1126_v11 = vpop.eup %1125 }
 0x1f6   :  { %v765_v29 = vmul.f32 %v1126_v11, %v763_v28  ;;  %vm770_vm1 = vweird.f32 %v1126_v11 }
 0x1f7   :  { %vm771_vm3 = vmor %vm769_vm2, %vm770_vm1 }
 0x1f8   :  { %v766_v30 = vsub.f32 1.0, %v765_v29 }
 0x1fa   :  { %v767_v32 = vmul.f32 %v1126_v11, %v766_v30 }
 0x1fc   :  { %v768_v34 = vadd.f32 %v1126_v11, %v767_v32 }
 0x1fe   :  { %v772_v37 = vsel %vm771_vm3, %v1126_v11, %v768_v34 }
 0x1ff   :  { %v777_v38 = vsel %vm774_vm4, %v776_v36, %v772_v37 }
 0x200   :  { %779 = vst [vmem:[%s1524_s5] sm:$0x1] %v777_v38 }

</bundles_post_ra>
